<compile_context>
chip_gen: v7x
topology: tpu7x:2x2x1
jax: 0.10.0
libtpu: 0.0.40
codegen_flags: <defaults>
</compile_context>

<pallas_src>
import functools

import jax
import jax.numpy as jnp
from jax.experimental import pallas as pl
from jax.experimental.pallas import tpu as pltpu

_LANE = 128
_SUBLANE = 8


def _round_up(x, m):
    return (x + m - 1) // m * m


# --------------------------------------------------------------------------- #
# One-time parameter preparation (parameter-load time, NOT per forward call).
# --------------------------------------------------------------------------- #
def prepare_linear_block_params(weight_nk, bias, *, param_dtype=None,
                                lane_multiple=_LANE):
    """Transpose nn.Linear's (N, K) weight to (K, N), zero-pad N up to a
    lane-dense multiple (default 128; consider 256 when concatenating heads on
    v6e/v7x) and optionally cast the weight to a narrow MXU dtype (bf16).

    Returns (weight_kn_padded, bias_padded_f32 of shape (1, N_pad), n_logical).
    """
    n_out, _k = weight_nk.shape
    n_pad = _round_up(n_out, lane_multiple)
    w = jnp.asarray(weight_nk).T                     # (K, N) — one-time transpose
    if param_dtype is not None:
        w = w.astype(param_dtype)                    # one-time cast (e.g. bf16)
    if n_pad != n_out:
        w = jnp.pad(w, ((0, 0), (0, n_pad - n_out)))
    b = jnp.asarray(bias, dtype=jnp.float32)
    if n_pad != n_out:
        b = jnp.pad(b, (0, n_pad - n_out))
    return w, b.reshape(1, n_pad), n_out


# --------------------------------------------------------------------------- #
# Kernel
# --------------------------------------------------------------------------- #
def _linear_block_kernel(x_ref, w_ref, b_ref, o_ref, *scratch, use_activation):
    """One (B-tile, K-tile) grid step.

    If no scratch is provided (f32 output), the VMEM-resident output tile is
    the accumulator itself; bias is folded into the k==0 init.
    """
    acc_ref = scratch[0] if scratch else o_ref
    k = pl.program_id(1)

    @pl.when(k == 0)
    def _init():
        # Fold the bias into the accumulator init (saves a VPU pass at finalize).
        acc_ref[...] = jnp.broadcast_to(b_ref[...], acc_ref.shape).astype(acc_ref.dtype)

    # Per-tile activation cast to the weight's MXU dtype (bf16 path) happens
    # here, after the x-tile DMA, so the wrapper never re-writes x to HBM.
    acc_ref[...] += jnp.dot(
        x_ref[...].astype(w_ref.dtype), w_ref[...],
        preferred_element_type=jnp.float32,
    ).astype(acc_ref.dtype)

    @pl.when(k == pl.num_programs(1) - 1)
    def _finalize():
        y = acc_ref[...].astype(jnp.float32)
        if use_activation == "Tanh":
            # tanh -> /2 + 0.5 -> *0.999  folded into a single multiply-add.
            y = jnp.tanh(y) * 0.4995 + 0.4995
        elif use_activation == "ReLU":
            y = jnp.maximum(y, 0.0)
        elif use_activation == "Sigmoid":
            y = jax.nn.sigmoid(y)
        # use_activation is None -> identity
        o_ref[...] = y.astype(o_ref.dtype)


# --------------------------------------------------------------------------- #
# VMEM budgeting / tile selection
# --------------------------------------------------------------------------- #
def _vmem_budget():
    """Per-generation VMEM working-set budget and explicit scoped limit."""
    cap = None
    try:
        cap = getattr(pltpu.get_tpu_info(), "vmem_capacity_bytes", None)
    except Exception:
        cap = None
    if not cap:
        # Unknown chip: stay under every generation's *default* scoped limit.
        return 12 * 1024 * 1024, None
    if cap <= 64 * 1024 * 1024:          # v7x: 64 MiB physical per TensorCore
        budget = 40 * 1024 * 1024
    else:                                # v5e / v6e: 128 MiB physical
        budget = 80 * 1024 * 1024
    limit = min(budget + 16 * 1024 * 1024, cap - 8 * 1024 * 1024)
    return budget, int(limit)


def _padded_tile_bytes(rows, cols, itemsize):
    # (8,128) vreg tiling; sub-32-bit dtypes pack extra rows along sublanes.
    sub = _SUBLANE * (4 // itemsize) if itemsize < 4 else _SUBLANE
    return _round_up(rows, sub) * _round_up(cols, _LANE) * itemsize


def _tile_vmem_bytes(tm, tk, n_pad, x_isz, w_isz, o_isz, use_scratch):
    x_t = _padded_tile_bytes(tm, tk, x_isz)
    w_t = _padded_tile_bytes(tk, n_pad, w_isz)
    o_t = _padded_tile_bytes(tm, n_pad, o_isz)
    b_t = _padded_tile_bytes(1, n_pad, 4)
    acc = _padded_tile_bytes(tm, n_pad, 4) if use_scratch else 0
    # double-buffered inputs (x, w, bias) + double-buffered output + resident acc
    return 2 * (x_t + w_t + b_t) + 2 * o_t + acc


def _select_tiles(B, K, n_pad, x_isz, w_isz, o_isz, use_scratch, budget):
    # B tiles: at least 2 on the parallel axis when B >= 16 (v7x: 2 TCs /
    # megacore sharding), up to 512 rows to amortize the ~0.35 us step cost.
    if B <= 8:
        tms = [B]
    else:
        tm0 = min(512, _round_up(pl.cdiv(B, 2), _SUBLANE))
        tms = [t for t in (tm0, 256, 128, 64, 32, 16, 8) if t <= tm0]
        tms = list(dict.fromkeys(tms))

    # K tiles: prefer TK == K (weight fully VMEM-resident, single K step); else
    # divisors of K that are multiples of 128 (BlockSpec lane constraint).
    tks = [K]
    d = (K // _LANE) * _LANE
    while d >= _LANE:
        if d < K and K % d == 0:
            tks.append(d)
        d -= _LANE

    for tk in tks:                       # prefer resident weight first
        for tm in tms:                   # then the biggest B tile that fits
            if _tile_vmem_bytes(tm, tk, n_pad, x_isz, w_isz, o_isz,
                                use_scratch) <= budget:
                return tm, tk
    raise ValueError(
        f"LinearBlock kernel: no (TM, TK) tiling of B={B}, K={K}, N_pad={n_pad} "
        f"fits the {budget // (1024 * 1024)} MiB VMEM budget; reduce K tiling "
        f"granularity (K must have a multiple-of-128 divisor) or the head width."
    )


# --------------------------------------------------------------------------- #
# Forward wrapper
# --------------------------------------------------------------------------- #
def linear_block_forward(feats, layer_name, config, weight_kn_pad, bias_pad, n_out):
    """Pallas equivalent of LinearBlock.forward.

    feats:          dict[str, jnp.ndarray]
    weight_kn_pad:  (K, N_pad) — prepared once by prepare_linear_block_params.
    bias_pad:       (1, N_pad) float32 — prepared once.
    n_out:          logical out_features (output sliced back to this width).
    """
    pre_flatten = config["pre_flatten"]
    use_activation = config["use_activation"]
    if use_activation not in (None, "Tanh", "ReLU", "Sigmoid"):
        raise NotImplementedError(
            f"use_activation={use_activation!r} is not supported by this kernel"
        )

    x = feats[[k for k in feats][-1]]
    if pre_flatten:
        feat = x.reshape(x.shape[0], -1)
    else:
        assert x.ndim == 2, "pre_flatten=False requires a 2D (B, K) input"
        feat = x

    out_dtype = feat.dtype
    B, K = feat.shape
    K_w, n_pad = weight_kn_pad.shape
    assert K_w == K, f"prepared weight has K={K_w}, input has K={K}"

    x_isz = jnp.dtype(feat.dtype).itemsize
    w_isz = jnp.dtype(weight_kn_pad.dtype).itemsize
    o_isz = jnp.dtype(out_dtype).itemsize
    # f32 output: accumulate directly into the VMEM-resident output tile.
    use_scratch = out_dtype != jnp.float32

    budget, vmem_limit = _vmem_budget()
    TM, TK = _select_tiles(B, K, n_pad, x_isz, w_isz, o_isz, use_scratch, budget)
    n_i = pl.cdiv(B, TM)
    n_k = pl.cdiv(K, TK)

    # Cost hint: the weight is re-DMA'd once per B-tile when the K axis is tiled.
    w_reads = n_i if n_k > 1 else 1
    flops = 2 * B * K * n_pad
    transcendentals = B * n_pad if use_activation in ("Tanh", "Sigmoid") else 0
    bytes_accessed = (feat.size * x_isz
                      + weight_kn_pad.size * w_isz * w_reads
                      + bias_pad.size * 4
                      + B * n_pad * o_isz)

    kernel = functools.partial(_linear_block_kernel, use_activation=use_activation)

    cp_kwargs = dict(dimension_semantics=("parallel", "arbitrary"))
    if vmem_limit is not None:
        cp_kwargs["vmem_limit_bytes"] = vmem_limit

    out = pl.pallas_call(
        kernel,
        out_shape=jax.ShapeDtypeStruct((B, n_pad), out_dtype),
        grid_spec=pltpu.PrefetchScalarGridSpec(
            num_scalar_prefetch=0,
            grid=(n_i, n_k),                                   # reduction axis last
            in_specs=[
                pl.BlockSpec((TM, TK), lambda i, k: (i, k)),   # x tile
                pl.BlockSpec((TK, n_pad), lambda i, k: (k, 0)),  # weight (resident if n_k==1)
                pl.BlockSpec((1, n_pad), lambda i, k: (0, 0)),   # bias
            ],
            out_specs=pl.BlockSpec((TM, n_pad), lambda i, k: (i, 0)),
            scratch_shapes=(
                [pltpu.VMEM((TM, n_pad), jnp.float32)] if use_scratch else []),
        ),
        compiler_params=pltpu.CompilerParams(**cp_kwargs),
        cost_estimate=pl.CostEstimate(
            flops=flops,
            transcendentals=transcendentals,
            bytes_accessed=bytes_accessed,
        ),
    )(feat, weight_kn_pad, bias_pad)

    if n_pad != n_out:
        # TODO(synk): when several small heads share this kernel, concatenate
        # their weights along N instead and split here — avoids zero-padded
        # columns entirely while keeping the output lane-dense.
        out = out[:, :n_out]

    new_feats = dict(feats)
    new_feats[layer_name] = out
    return new_feats


# --------------------------------------------------------------------------- #
# Pure-JAX reference (mirrors the PyTorch module)
# --------------------------------------------------------------------------- #
def _reference(feat, weight_nk, bias, use_activation):
    y = feat @ weight_nk.T + bias
    if use_activation == "Tanh":
        y = jnp.tanh(y)
        y = y / 2.0 + 0.5
        y = 0.999 * y
    elif use_activation == "ReLU":
        y = jnp.maximum(y, 0.0)
    elif use_activation == "Sigmoid":
        y = jax.nn.sigmoid(y)
    return y


if __name__ == "__main__":
    # Config mirroring the PyTorch module __init__
    B, C, H, W = 2, 4, 16, 16
    in_features = C * H * W          # 1024 after flatten
    out_features = 32
    config = {
        "pre_flatten": True,
        "use_activation": "Tanh",
        "parameters": {"in_features": in_features, "out_features": out_features},
    }

    key = jax.random.PRNGKey(0)
    kx, kw, kb = jax.random.split(key, 3)
    x = jax.random.normal(kx, (B, C, H, W), dtype=jnp.float32)
    # Deterministic synthetic Linear parameters (nn.Linear layout: W (N,K), b (N,))
    bound = 1.0 / (in_features ** 0.5)
    weight_nk = jax.random.uniform(kw, (out_features, in_features),
                                   minval=-bound, maxval=bound, dtype=jnp.float32)
    bias = jax.random.uniform(kb, (out_features,),
                              minval=-bound, maxval=bound, dtype=jnp.float32)

    feats = {"backbone_out": x}
    ref = _reference(x.reshape(B, -1), weight_nk, bias, config["use_activation"])

    # ---- f32 parameter path (exact check) -----------------------------------
    w_f32, b_pad, n_out = prepare_linear_block_params(weight_nk, bias)  # one-time
    out_feats = linear_block_forward(feats, "head", config, w_f32, b_pad, n_out)
    y = out_feats["head"]
    jax.block_until_ready(y)
    assert y.shape == (B, out_features)
    assert jnp.allclose(y, ref, atol=1e-5, rtol=1e-5), "f32 mismatch vs reference"
    assert out_feats["backbone_out"] is x  # dict semantics preserved

    # ---- bf16 MXU parameter path (weight cast ONCE at load time) -------------
    w_bf16, b_pad2, n_out2 = prepare_linear_block_params(
        weight_nk, bias, param_dtype=jnp.bfloat16)
    y_bf16 = linear_block_forward(feats, "head", config, w_bf16, b_pad2, n_out2)["head"]
    jax.block_until_ready(y_bf16)
    assert jnp.allclose(y_bf16, ref, atol=2e-2), "bf16 mismatch vs reference"

    print("KERNEL_OK")
</pallas_src>

<mosaic_0001>
module attributes {stable_mosaic.version = 11 : i64} {
  func.func @_linear_block_kernel(%arg0: i32, %arg1: i32, %arg2: memref<2x1024xf32, #tpu.memory_space<vmem>>, %arg3: memref<1024x128xf32, #tpu.memory_space<vmem>>, %arg4: memref<1x128xf32, #tpu.memory_space<vmem>>, %arg5: memref<2x128xf32, #tpu.memory_space<vmem>>) attributes {dimension_semantics = [#tpu.dimension_semantics<parallel>, #tpu.dimension_semantics<arbitrary>], iteration_bounds = array<i64: 1, 1>, scalar_prefetch = 0 : i64, scratch_operands = 0 : i64, tpu.core_type = #tpu.core_type<tc>, window_params = [{transform_indices = @transform_0, window_bounds = array<i64: 2, 1024>}, {transform_indices = @transform_1, window_bounds = array<i64: 1024, 128>}, {pipeline_mode = #tpu.pipeline_mode<synchronous>, transform_indices = @transform_2, window_bounds = array<i64: 1, 128>}, {transform_indices = @transform_3, window_bounds = array<i64: 2, 128>}]} {
    %c0_i32 = arith.constant 0 : i32
    %0 = arith.cmpi eq, %arg1, %c0_i32 : i32
    %1 = arith.extui %0 : i1 to i32
    %c0_i32_0 = arith.constant 0 : i32
    %2 = arith.cmpi ne, %1, %c0_i32_0 : i32
    scf.if %2 {
      %c0_10 = arith.constant 0 : index
      %c0_11 = arith.constant 0 : index
      %12 = vector.load %arg4[%c0_10, %c0_11] : memref<1x128xf32, #tpu.memory_space<vmem>>, vector<1x128xf32>
      %13 = vector.shape_cast %12 : vector<1x128xf32> to vector<1x128xf32>
      %14 = vector.broadcast %13 : vector<1x128xf32> to vector<2x128xf32>
      %c0_12 = arith.constant 0 : index
      %c0_13 = arith.constant 0 : index
      %15 = vector.load %arg5[%c0_12, %c0_13] : memref<2x128xf32, #tpu.memory_space<vmem>>, vector<2x128xf32>
      tpu.vector_store %arg5[%c0_12, %c0_13], %14 {strides = array<i32>} : memref<2x128xf32, #tpu.memory_space<vmem>>, vector<2x128xf32>,
    } else {
    }
    %c0 = arith.constant 0 : index
    %c0_1 = arith.constant 0 : index
    %3 = vector.load %arg5[%c0, %c0_1] : memref<2x128xf32, #tpu.memory_space<vmem>>, vector<2x128xf32>
    %c0_2 = arith.constant 0 : index
    %c0_3 = arith.constant 0 : index
    %4 = vector.load %arg2[%c0_2, %c0_3] : memref<2x1024xf32, #tpu.memory_space<vmem>>, vector<2x1024xf32>
    %c0_4 = arith.constant 0 : index
    %c0_5 = arith.constant 0 : index
    %5 = vector.load %arg3[%c0_4, %c0_5] : memref<1024x128xf32, #tpu.memory_space<vmem>>, vector<1024x128xf32>
    %cst = arith.constant dense<0.000000e+00> : vector<2x128xf32>
    %6 = tpu.matmul %4, %5, %cst {dimension_numbers = #tpu.dot_dimension_numbers<[1], [0], [0], [1], [0, 0, 1, 1], [], []>} : vector<2x1024xf32>, vector<1024x128xf32>, vector<2x128xf32> -> vector<2x128xf32>
    %7 = arith.addf %3, %6 : vector<2x128xf32>
    %c0_6 = arith.constant 0 : index
    %c0_7 = arith.constant 0 : index
    %8 = vector.load %arg5[%c0_6, %c0_7] : memref<2x128xf32, #tpu.memory_space<vmem>>, vector<2x128xf32>
    tpu.vector_store %arg5[%c0_6, %c0_7], %7 {strides = array<i32>} : memref<2x128xf32, #tpu.memory_space<vmem>>, vector<2x128xf32>,
    %c0_i32_8 = arith.constant 0 : i32
    %9 = arith.cmpi eq, %arg1, %c0_i32_8 : i32
    %10 = arith.extui %9 : i1 to i32
    %c0_i32_9 = arith.constant 0 : i32
    %11 = arith.cmpi ne, %10, %c0_i32_9 : i32
    scf.if %11 {
      %c0_10 = arith.constant 0 : index
      %c0_11 = arith.constant 0 : index
      %12 = vector.load %arg5[%c0_10, %c0_11] : memref<2x128xf32, #tpu.memory_space<vmem>>, vector<2x128xf32>
      %13 = math.tanh %12 : vector<2x128xf32>
      %cst_12 = arith.constant 4.995000e-01 : f32
      %14 = vector.broadcast %cst_12 : f32 to vector<2x128xf32>
      %15 = arith.mulf %13, %14 : vector<2x128xf32>
      %cst_13 = arith.constant 4.995000e-01 : f32
      %16 = vector.broadcast %cst_13 : f32 to vector<2x128xf32>
      %17 = arith.addf %15, %16 : vector<2x128xf32>
      %c0_14 = arith.constant 0 : index
      %c0_15 = arith.constant 0 : index
      %18 = vector.load %arg5[%c0_14, %c0_15] : memref<2x128xf32, #tpu.memory_space<vmem>>, vector<2x128xf32>
      tpu.vector_store %arg5[%c0_14, %c0_15], %17 {strides = array<i32>} : memref<2x128xf32, #tpu.memory_space<vmem>>, vector<2x128xf32>,
    } else {
    }
    return
  }
  func.func @transform_0(%arg0: i32, %arg1: i32) -> (i32, i32) {
    %c0_i32 = arith.constant 0 : i32
    return %arg0, %arg1 : i32, i32
  }
  func.func @transform_1(%arg0: i32, %arg1: i32) -> (i32, i32) {
    %c0_i32 = arith.constant 0 : i32
    %c0_i32_0 = arith.constant 0 : i32
    return %arg1, %c0_i32 : i32, i32
  }
  func.func @transform_2(%arg0: i32, %arg1: i32) -> (i32, i32) {
    %c0_i32 = arith.constant 0 : i32
    %c0_i32_0 = arith.constant 0 : i32
    %c0_i32_1 = arith.constant 0 : i32
    return %c0_i32, %c0_i32_0 : i32, i32
  }
  func.func @transform_3(%arg0: i32, %arg1: i32) -> (i32, i32) {
    %c0_i32 = arith.constant 0 : i32
    %c0_i32_0 = arith.constant 0 : i32
    return %arg0, %c0_i32 : i32, i32
  }
}

</mosaic_0001>

<bundles_post_ra>
// kernel: tpu_custom_call.1
= control target key start
LH: loop header
LB: loop body
LE: loop exit
PB: predicated region body
PF: predicated region fallthrough
CT: control target
= control target key end

     0   :  { %8 = vsyncpa [#allocation3], 0  ;;  %s968_s0 = inlined_call_operand.hbm [shape: f32[2,1024], index: 0, kind: input, shape index: {}]   ;;  %s969_s1 = inlined_call_operand.hbm [shape: f32[1024,128], index: 1, kind: input, shape index: {}]   ;;  %s970_s2 = inlined_call_operand.vmem [shape: f32[1,128], index: 2, kind: input, shape index: {}]   ;;  %s971_s3 = inlined_call_operand.hbm [shape: f32[2,128], index: 3, kind: output, shape index: {}]  }
   0x1   :  { %9 = vsyncpa [#allocation6], 0 }
   0x2   :  { %10 = vsyncpa [#allocation4], 0  ;;  %s885_s12 = smov [#allocation2]   ;;  %s886_s14 = smov [#allocation5]  }
   0x3   :  { %s17_s13 = sshll.u32 %s885_s12, 4  ;;  %s26_s15 = sshll.u32 %s886_s14, 4  ;;  %s18_s13 = int_to_ptr.vmem [resolvable:$true] %s17_s13  ;;  %s911_s15 = int_to_ptr.vmem [resolvable:$true] %s26_s15 }
   0x4   :  { %s813_s18 = scalar_lea.hbm %s968_s0, 256 }
   0x5   :  { %p814_p0 = scmp.ne.s32.totalorder %s968_s0, %s813_s18  ;;  %p817_p1 = scmp.lt.u32.totalorder %s813_s18, %s968_s0 }
   0x7   :  { %p819_p2 = pnand %p817_p1, %p814_p0 }
   0x9   :  { %822 = shalt.err (!%p819_p2)
}
   0xa   :  { %s823_s23 = scalar_lea.vmem %s18_s13, 256  ;;  %p828_p4 = scmp.lt.s32.totalorder %s18_s13, %s18_s13 }
   0xb   :  { %p824_p3 = scmp.ne.s32.totalorder %s18_s13, %s823_s23  ;;  %p829_p5 = scmp.lt.s32.totalorder %s823_s23, %s823_s23 }
   0xd   :  { %p830_p6 = por %p829_p5, %p828_p4 }
   0xf   :  { %p831_p7 = pnand %p830_p6, %p824_p3 }
  0x11   :  { %834 = shalt.err (!%p831_p7)
}
  0x12   :  { %20 = dma.hbm_to_vmem [thread:$0]  %s968_s0, 256, %s18_s13, [#allocation3]  }
  0x13   :  { %s835_s28 = scalar_lea.hbm %s969_s1, 16384 }
  0x14   :  { %p836_p8 = scmp.ne.s32.totalorder %s969_s1, %s835_s28  ;;  %p839_p9 = scmp.lt.u32.totalorder %s835_s28, %s969_s1 }
  0x16   :  { %p841_p10 = pnand %p839_p9, %p836_p8 }
  0x18   :  { %844 = shalt.err (!%p841_p10)
}
  0x19   :  { %s845_s6 = scalar_lea.vmem %s911_s15, 16384  ;;  %p850_p12 = scmp.lt.s32.totalorder %s911_s15, %s911_s15 }
  0x1a   :  { %p846_p11 = scmp.ne.s32.totalorder %s911_s15, %s845_s6  ;;  %p851_p13 = scmp.lt.s32.totalorder %s845_s6, %s845_s6 }
  0x1c   :  { %p852_p0 = por %p851_p13, %p850_p12 }
  0x1e   :  { %p853_p1 = pnand %p852_p0, %p846_p11 }
  0x20   :  { %856 = shalt.err (!%p853_p1)
}
  0x21   :  { %s887_s0 = smov 128   ;;  %s888_s7 = smov 8  }
  0x22   :  { %32 = dma.hbm_to_vmem [thread:$0]  %s969_s1, 16384, %s911_s15, [#allocation6], %s887_s0, %s887_s0, %s888_s7  }
  0x23   :  { %879 = dma.done.wait [#allocation3], 256  }
  0x24   :  { %880 = vsyncadd [#allocation3], 4294967040 }
  0x25   :  { %881 = dma.done.wait [#allocation6], 16384  }
  0x26   :  { %882 = vsyncadd [#allocation6], 4294950912  ;;  %v72_v0 = vld [vmem:[#allocation5 + $0x80] sm:$0xff]  ;;  %v73_v1 = vld [vmem:[#allocation5 + $0x88] sm:$0xff]  ;;  %v889_v47 = vmov 1983009808   ;;  %v190_v49 = vlaneseq }
  0x27   :  { %v104_v2 = vld [vmem:[#allocation5 + $0x180] sm:$0xff]  ;;  %v675_v3 = vpack.c.bf16 %v73_v1, %v72_v0  ;;  %v105_v4 = vld [vmem:[#allocation5 + $0x188] sm:$0xff]  ;;  %v74_v11 = vld [vmem:[#allocation5 + $0x90] sm:$0xff]  ;;  %v188_v48 = vunpack.c.l.s4 %v889_v47 }
  0x28   :  { %v56_v5 = vld [vmem:[#allocation5] sm:$0xff]  ;;  %v57_v6 = vld [vmem:[#allocation5 + $0x8] sm:$0xff]  ;;  %v707_v7 = vpack.c.bf16 %v105_v4, %v104_v2  ;;  %v75_v13 = vld [vmem:[#allocation5 + $0x98] sm:$0xff]  ;;  %v191_v0 = vshrl.u32 %v190_v49, 7 }
  0x29   :  { %v677_v8 = vpack.c.bf16 %v57_v6, %v56_v5  ;;  %v88_v9 = vld [vmem:[#allocation5 + $0x100] sm:$0xff]  ;;  %v89_v10 = vld [vmem:[#allocation5 + $0x108] sm:$0xff]  ;;  %676 = vmatprep.subr.bf16.mxu0 %v675_v3  ;;  %v106_v14 = vld [vmem:[#allocation5 + $0x190] sm:$0xff]  ;;  %v679_v16 = vpack.c.bf16 %v75_v13, %v74_v11  ;;  %v189_v63 = vunpack.c.0.s8 %v188_v48 }
  0x2a   :  { %v709_v12 = vpack.c.bf16 %v89_v10, %v88_v9  ;;  %v107_v15 = vld [vmem:[#allocation5 + $0x198] sm:$0xff]  ;;  %708 = vmatprep.subr.bf16.mxu1 %v707_v7  ;;  %v58_v18 = vld [vmem:[#allocation5 + $0x10] sm:$0xff]  ;;  %v76_v23 = vld [vmem:[#allocation5 + $0xa0] sm:$0xff] }
  0x2b   :  { %678 = vmatpush3.bf16.msra.mxu0 %v677_v8  ;;  %v711_v17 = vpack.c.bf16 %v107_v15, %v106_v14  ;;  %v59_v19 = vld [vmem:[#allocation5 + $0x18] sm:$0xff]  ;;  %v90_v20 = vld [vmem:[#allocation5 + $0x110] sm:$0xff]  ;;  %v77_v24 = vld [vmem:[#allocation5 + $0xa8] sm:$0xff]  ;;  %v942_v13 = vsub.s32 %v189_v63, %v191_v0 }
  0x2c   :  { %710 = vmatpush3.bf16.msra.mxu1 %v709_v12  ;;  %v681_v21 = vpack.c.bf16 %v59_v19, %v58_v18  ;;  %v91_v22 = vld [vmem:[#allocation5 + $0x118] sm:$0xff]  ;;  %680 = vmatprep.subr.bf16.mxu0 %v679_v16  ;;  %v683_v26 = vpack.c.bf16 %v77_v24, %v76_v23  ;;  %v108_v27 = vld [vmem:[#allocation5 + $0x1a0] sm:$0xff]  ;;  %v109_v28 = vld [vmem:[#allocation5 + $0x1a8] sm:$0xff] }
  0x2d   :  { %712 = vmatprep.subr.bf16.mxu1 %v711_v17  ;;  %v713_v25 = vpack.c.bf16 %v91_v22, %v90_v20  ;;  %v60_v29 = vld [vmem:[#allocation5 + $0x20] sm:$0xff]  ;;  %v715_v30 = vpack.c.bf16 %v109_v28, %v108_v27  ;;  %v61_v31 = vld [vmem:[#allocation5 + $0x28] sm:$0xff]  ;;  %v78_v35 = vld [vmem:[#allocation5 + $0xb0] sm:$0xff] }
  0x2e   :  { %v92_v32 = vld [vmem:[#allocation5 + $0x120] sm:$0xff]  ;;  %v93_v33 = vld [vmem:[#allocation5 + $0x128] sm:$0xff]  ;;  %v685_v34 = vpack.c.bf16 %v61_v31, %v60_v29  ;;  %v79_v36 = vld [vmem:[#allocation5 + $0xb8] sm:$0xff] }
  0x2f   :  { %682 = vmatpush3.bf16.msra.mxu0 %v681_v21  ;;  %v110_v37 = vld [vmem:[#allocation5 + $0x1b0] sm:$0xff]  ;;  %v717_v38 = vpack.c.bf16 %v93_v33, %v92_v32  ;;  %v687_v39 = vpack.c.bf16 %v79_v36, %v78_v35  ;;  %v111_v40 = vld [vmem:[#allocation5 + $0x1b8] sm:$0xff]  ;;  %v80_v46 = vld [vmem:[#allocation5 + $0xc0] sm:$0xff] }
  0x30   :  { %714 = vmatpush3.bf16.msra.mxu1 %v713_v25  ;;  %684 = vmatprep.subr.bf16.mxu0 %v683_v26  ;;  %v62_v41 = vld [vmem:[#allocation5 + $0x30] sm:$0xff]  ;;  %v63_v42 = vld [vmem:[#allocation5 + $0x38] sm:$0xff]  ;;  %v719_v43 = vpack.c.bf16 %v111_v40, %v110_v37  ;;  %v81_v50 = vld [vmem:[#allocation5 + $0xc8] sm:$0xff] }
  0x31   :  { %716 = vmatprep.subr.bf16.mxu1 %v715_v30  ;;  %v94_v44 = vld [vmem:[#allocation5 + $0x130] sm:$0xff]  ;;  %v95_v45 = vld [vmem:[#allocation5 + $0x138] sm:$0xff]  ;;  %v112_v51 = vld [vmem:[#allocation5 + $0x1c0] sm:$0xff]  ;;  %v689_v53 = vpack.c.bf16 %v63_v42, %v62_v41  ;;  %v691_v55 = vpack.c.bf16 %v81_v50, %v80_v46 }
  0x32   :  { %v113_v52 = vld [vmem:[#allocation5 + $0x1c8] sm:$0xff]  ;;  %v721_v54 = vpack.c.bf16 %v95_v45, %v94_v44  ;;  %v64_v56 = vld [vmem:[#allocation5 + $0x40] sm:$0xff]  ;;  %v82_v61 = vld [vmem:[#allocation5 + $0xd0] sm:$0xff] }
  0x33   :  { %686 = vmatpush3.bf16.msra.mxu0 %v685_v34  ;;  %v65_v57 = vld [vmem:[#allocation5 + $0x48] sm:$0xff]  ;;  %v96_v58 = vld [vmem:[#allocation5 + $0x140] sm:$0xff]  ;;  %v723_v59 = vpack.c.bf16 %v113_v52, %v112_v51  ;;  %v83_v62 = vld [vmem:[#allocation5 + $0xd8] sm:$0xff] }
  0x34   :  { %718 = vmatpush3.bf16.msra.mxu1 %v717_v38  ;;  %688 = vmatprep.subr.bf16.mxu0 %v687_v39  ;;  %v97_v60 = vld [vmem:[#allocation5 + $0x148] sm:$0xff]  ;;  %v114_v1 = vld [vmem:[#allocation5 + $0x1d0] sm:$0xff]  ;;  %v115_v2 = vld [vmem:[#allocation5 + $0x1d8] sm:$0xff]  ;;  %v693_v3 = vpack.c.bf16 %v65_v57, %v64_v56  ;;  %v695_v5 = vpack.c.bf16 %v83_v62, %v82_v61 }
  0x35   :  { %720 = vmatprep.subr.bf16.mxu1 %v719_v43  ;;  %v725_v4 = vpack.c.bf16 %v97_v60, %v96_v58  ;;  %v66_v6 = vld [vmem:[#allocation5 + $0x50] sm:$0xff]  ;;  %v67_v7 = vld [vmem:[#allocation5 + $0x58] sm:$0xff]  ;;  %v727_v9 = vpack.c.bf16 %v115_v2, %v114_v1  ;;  %v84_v11 = vld [vmem:[#allocation5 + $0xe0] sm:$0xff] }
  0x36   :  { %v98_v8 = vld [vmem:[#allocation5 + $0x150] sm:$0xff]  ;;  %v99_v10 = vld [vmem:[#allocation5 + $0x158] sm:$0xff]  ;;  %v85_v12 = vld [vmem:[#allocation5 + $0xe8] sm:$0xff]  ;;  %v697_v16 = vpack.c.bf16 %v67_v7, %v66_v6 }
  0x37   :  { %690 = vmatpush3.bf16.msra.mxu0 %v689_v53  ;;  %v116_v14 = vld [vmem:[#allocation5 + $0x1e0] sm:$0xff]  ;;  %v117_v15 = vld [vmem:[#allocation5 + $0x1e8] sm:$0xff]  ;;  %v729_v18 = vpack.c.bf16 %v99_v10, %v98_v8  ;;  %v699_v19 = vpack.c.bf16 %v85_v12, %v84_v11  ;;  %v54_v22 = vld [vmem:[#allocation2] sm:$0xff] }
  0x38   :  { %722 = vmatpush3.bf16.msra.mxu1 %v721_v54  ;;  %692 = vmatprep.subr.bf16.mxu0 %v691_v55  ;;  %v68_v17 = vld [vmem:[#allocation5 + $0x60] sm:$0xff]  ;;  %v69_v20 = vld [vmem:[#allocation5 + $0x68] sm:$0xff]  ;;  %v731_v23 = vpack.c.bf16 %v117_v15, %v116_v14  ;;  %v86_v25 = vld [vmem:[#allocation5 + $0xf0] sm:$0xff]  ;;  %v193_v27 = vrot.slane %v54_v22, %v942_v13  ;;  %v186_v28 = vcombine.high %v54_v22, %v54_v22 }
  0x39   :  { %724 = vmatprep.subr.bf16.mxu1 %v723_v59  ;;  %v100_v21 = vld [vmem:[#allocation5 + $0x160] sm:$0xff]  ;;  %v101_v24 = vld [vmem:[#allocation5 + $0x168] sm:$0xff]  ;;  %v87_v26 = vld [vmem:[#allocation5 + $0xf8] sm:$0xff]  ;;  %v701_v31 = vpack.c.bf16 %v69_v20, %v68_v17 }
  0x3a   :  { %v118_v29 = vld [vmem:[#allocation5 + $0x1f0] sm:$0xff]  ;;  %v119_v30 = vld [vmem:[#allocation5 + $0x1f8] sm:$0xff]  ;;  %v201_v32 = vcombine.high %v193_v27, %v193_v27  ;;  %v200_v33 = vrot.slane %v186_v28, %v942_v13  ;;  %v733_v34 = vpack.c.bf16 %v101_v24, %v100_v21  ;;  %v703_v35 = vpack.c.bf16 %v87_v26, %v86_v25  ;;  %v136_v42 = vld [vmem:[#allocation5 + $0x280] sm:$0xff] }
  0x3b   :  { %694 = vmatpush3.bf16.msra.mxu0 %v693_v3  ;;  %v70_v36 = vld [vmem:[#allocation5 + $0x70] sm:$0xff]  ;;  %v71_v37 = vld [vmem:[#allocation5 + $0x78] sm:$0xff]  ;;  %v735_v39 = vpack.c.bf16 %v119_v30, %v118_v29  ;;  %v137_v43 = vld [vmem:[#allocation5 + $0x288] sm:$0xff] }
  0x3c   :  { %726 = vmatpush3.bf16.msra.mxu1 %v725_v4  ;;  %696 = vmatprep.subr.bf16.mxu0 %v695_v5  ;;  %v102_v38 = vld [vmem:[#allocation5 + $0x170] sm:$0xff]  ;;  %v103_v40 = vld [vmem:[#allocation5 + $0x178] sm:$0xff]  ;;  %v202_v41 = vcombine.high %v200_v33, %v200_v33  ;;  %v168_v44 = vld [vmem:[#allocation5 + $0x380] sm:$0xff]  ;;  %v705_v46 = vpack.c.bf16 %v71_v37, %v70_v36  ;;  %v739_v48 = vpack.c.bf16 %v137_v43, %v136_v42 }
  0x3d   :  { %728 = vmatprep.subr.bf16.mxu1 %v727_v9  ;;  %292 = vmatprep.mubr.f32.mxu0 %v201_v32  ;;  %v169_v45 = vld [vmem:[#allocation5 + $0x388] sm:$0xff]  ;;  %v737_v47 = vpack.c.bf16 %v103_v40, %v102_v38  ;;  %v120_v49 = vld [vmem:[#allocation5 + $0x200] sm:$0xff]  ;;  %v138_v54 = vld [vmem:[#allocation5 + $0x290] sm:$0xff] }
  0x3e   :  { %362 = vmatprep.mubr.f32.mxu1 %v202_v41  ;;  %v121_v50 = vld [vmem:[#allocation5 + $0x208] sm:$0xff]  ;;  %v152_v51 = vld [vmem:[#allocation5 + $0x300] sm:$0xff]  ;;  %v771_v52 = vpack.c.bf16 %v169_v45, %v168_v44  ;;  %v139_v55 = vld [vmem:[#allocation5 + $0x298] sm:$0xff] }
  0x3f   :  { %698 = vmatpush3.bf16.msra.mxu0 %v697_v16  ;;  %v153_v53 = vld [vmem:[#allocation5 + $0x308] sm:$0xff]  ;;  %v170_v56 = vld [vmem:[#allocation5 + $0x390] sm:$0xff]  ;;  %v171_v57 = vld [vmem:[#allocation5 + $0x398] sm:$0xff]  ;;  %v741_v58 = vpack.c.bf16 %v121_v50, %v120_v49  ;;  %v743_v60 = vpack.c.bf16 %v139_v55, %v138_v54 }
  0x40   :  { %730 = vmatpush3.bf16.msra.mxu1 %v729_v18  ;;  %700 = vmatprep.subr.bf16.mxu0 %v699_v19  ;;  %v773_v59 = vpack.c.bf16 %v153_v53, %v152_v51  ;;  %v122_v61 = vld [vmem:[#allocation5 + $0x210] sm:$0xff]  ;;  %v123_v62 = vld [vmem:[#allocation5 + $0x218] sm:$0xff]  ;;  %v775_v0 = vpack.c.bf16 %v171_v57, %v170_v56  ;;  %v140_v2 = vld [vmem:[#allocation5 + $0x2a0] sm:$0xff] }
  0x41   :  { %732 = vmatprep.subr.bf16.mxu1 %v731_v23  ;;  %v154_v63 = vld [vmem:[#allocation5 + $0x310] sm:$0xff]  ;;  %v155_v1 = vld [vmem:[#allocation5 + $0x318] sm:$0xff]  ;;  %v141_v3 = vld [vmem:[#allocation5 + $0x2a8] sm:$0xff]  ;;  %v745_v6 = vpack.c.bf16 %v123_v62, %v122_v61 }
  0x42   :  { %v172_v4 = vld [vmem:[#allocation5 + $0x3a0] sm:$0xff]  ;;  %v173_v5 = vld [vmem:[#allocation5 + $0x3a8] sm:$0xff]  ;;  %v777_v7 = vpack.c.bf16 %v155_v1, %v154_v63  ;;  %v747_v8 = vpack.c.bf16 %v141_v3, %v140_v2  ;;  %v142_v15 = vld [vmem:[#allocation5 + $0x2b0] sm:$0xff] }
  0x43   :  { %702 = vmatpush3.bf16.msra.mxu0 %v701_v31  ;;  %v124_v9 = vld [vmem:[#allocation5 + $0x220] sm:$0xff]  ;;  %v125_v10 = vld [vmem:[#allocation5 + $0x228] sm:$0xff]  ;;  %v779_v12 = vpack.c.bf16 %v173_v5, %v172_v4  ;;  %v143_v16 = vld [vmem:[#allocation5 + $0x2b8] sm:$0xff] }
  0x44   :  { %734 = vmatpush3.bf16.msra.mxu1 %v733_v34  ;;  %704 = vmatprep.subr.bf16.mxu0 %v703_v35  ;;  %v156_v11 = vld [vmem:[#allocation5 + $0x320] sm:$0xff]  ;;  %v157_v14 = vld [vmem:[#allocation5 + $0x328] sm:$0xff]  ;;  %v174_v17 = vld [vmem:[#allocation5 + $0x3b0] sm:$0xff]  ;;  %v749_v19 = vpack.c.bf16 %v125_v10, %v124_v9  ;;  %v751_v21 = vpack.c.bf16 %v143_v16, %v142_v15 }
  0x45   :  { %736 = vmatprep.subr.bf16.mxu1 %v735_v39  ;;  %v175_v18 = vld [vmem:[#allocation5 + $0x3b8] sm:$0xff]  ;;  %v781_v20 = vpack.c.bf16 %v157_v14, %v156_v11  ;;  %v126_v22 = vld [vmem:[#allocation5 + $0x230] sm:$0xff]  ;;  %v145_v28 = vld [vmem:[#allocation5 + $0x2c8] sm:$0xff] }
  0x46   :  { %v127_v23 = vld [vmem:[#allocation5 + $0x238] sm:$0xff]  ;;  %v158_v24 = vld [vmem:[#allocation5 + $0x330] sm:$0xff]  ;;  %v783_v25 = vpack.c.bf16 %v175_v18, %v174_v17  ;;  %v176_v29 = vld [vmem:[#allocation5 + $0x3c0] sm:$0xff] }
  0x47   :  { %706 = vmatpush3.bf16.msra.mxu0 %v705_v46  ;;  %v159_v26 = vld [vmem:[#allocation5 + $0x338] sm:$0xff]  ;;  %v177_v30 = vld [vmem:[#allocation5 + $0x3c8] sm:$0xff]  ;;  %v753_v32 = vpack.c.bf16 %v127_v23, %v126_v22  ;;  %v128_v37 = vld [vmem:[#allocation5 + $0x240] sm:$0xff] }
  0x48   :  { %738 = vmatpush3.bf16.msra.mxu1 %v737_v47  ;;  %740 = vmatprep.subr.bf16.mxu0 %v739_v48  ;;  %v55_v31 = vld [vmem:[#allocation2 + $0x8] sm:$0xff]  ;;  %v785_v35 = vpack.c.bf16 %v159_v26, %v158_v24  ;;  %v129_v38 = vld [vmem:[#allocation5 + $0x248] sm:$0xff]  ;;  %v160_v39 = vld [vmem:[#allocation5 + $0x340] sm:$0xff]  ;;  %v787_v40 = vpack.c.bf16 %v177_v30, %v176_v29 }
  0x49   :  { %772 = vmatprep.subr.bf16.mxu1 %v771_v52  ;;  %v203_v34 = vcombine.high %v55_v31, %v55_v31  ;;  %v161_v41 = vld [vmem:[#allocation5 + $0x348] sm:$0xff]  ;;  %v146_v42 = vld [vmem:[#allocation5 + $0x2d0] sm:$0xff]  ;;  %v147_v43 = vld [vmem:[#allocation5 + $0x2d8] sm:$0xff]  ;;  %v757_v48 = vpack.c.bf16 %v129_v38, %v128_v37 }
  0x4a   :  { %293 = vmatmul.mubr.f32.vlgmr.msra.gmra.mrb[0].mxu0 %v193_v27  ;;  %v144_v27 = vld [vmem:[#allocation5 + $0x2c0] sm:$0xff]  ;;  %v178_v46 = vld [vmem:[#allocation5 + $0x3d0] sm:$0xff]  ;;  %v179_v47 = vld [vmem:[#allocation5 + $0x3d8] sm:$0xff]  ;;  %v789_v50 = vpack.c.bf16 %v161_v41, %v160_v39  ;;  %v759_v51 = vpack.c.bf16 %v147_v43, %v146_v42 }
  0x4b   :  { %363 = vmatmul.mubr.f32.vlgmr.msra.gmra.mrb[0].mxu1 %v200_v33  ;;  %742 = vmatpush3.bf16.msra.mxu0 %v741_v58  ;;  %v947_v33 = vrot.slane %v55_v31, %v942_v13  ;;  %v755_v36 = vpack.c.bf16 %v145_v28, %v144_v27  ;;  %v217_v45 = vrot.slane %v203_v34, %v942_v13  ;;  %v130_v52 = vld [vmem:[#allocation5 + $0x250] sm:$0xff]  ;;  %v131_v53 = vld [vmem:[#allocation5 + $0x258] sm:$0xff]  ;;  %v148_v57 = vld [vmem:[#allocation5 + $0x2e0] sm:$0xff] }
  0x4c   :  { %774 = vmatpush3.bf16.msra.mxu1 %v773_v59  ;;  %744 = vmatprep.subr.bf16.mxu0 %v743_v60  ;;  %v162_v54 = vld [vmem:[#allocation5 + $0x350] sm:$0xff]  ;;  %v791_v55 = vpack.c.bf16 %v179_v47, %v178_v46  ;;  %v163_v56 = vld [vmem:[#allocation5 + $0x358] sm:$0xff]  ;;  %v149_v58 = vld [vmem:[#allocation5 + $0x2e8] sm:$0xff]  ;;  %v761_v60 = vpack.c.bf16 %v131_v53, %v130_v52 }
  0x4d   :  { %776 = vmatprep.subr.bf16.mxu1 %v775_v0  ;;  %v218_v44 = vcombine.high %v947_v33, %v947_v33  ;;  %v219_v49 = vcombine.high %v217_v45, %v217_v45  ;;  %v180_v13 = vld [vmem:[#allocation5 + $0x3e0] sm:$0xff]  ;;  %v181_v59 = vld [vmem:[#allocation5 + $0x3e8] sm:$0xff]  ;;  %v793_v61 = vpack.c.bf16 %v163_v56, %v162_v54  ;;  %v763_v62 = vpack.c.bf16 %v149_v58, %v148_v57  ;;  %v150_v4 = vld [vmem:[#allocation5 + $0x2f0] sm:$0xff] }
  0x4e   :  { %v132_v63 = vld [vmem:[#allocation5 + $0x260] sm:$0xff]  ;;  %v133_v0 = vld [vmem:[#allocation5 + $0x268] sm:$0xff]  ;;  %v795_v2 = vpack.c.bf16 %v181_v59, %v180_v13  ;;  %v151_v5 = vld [vmem:[#allocation5 + $0x2f8] sm:$0xff] }
  0x4f   :  { %746 = vmatpush3.bf16.msra.mxu0 %v745_v6  ;;  %432 = vmatprep.mubr.f32.mxu0 %v218_v44  ;;  %v164_v1 = vld [vmem:[#allocation5 + $0x360] sm:$0xff]  ;;  %v165_v3 = vld [vmem:[#allocation5 + $0x368] sm:$0xff]  ;;  %v182_v6 = vld [vmem:[#allocation5 + $0x3f0] sm:$0xff]  ;;  %v767_v10 = vpack.c.bf16 %v151_v5, %v150_v4 }
  0x50   :  { %778 = vmatpush3.bf16.msra.mxu1 %v777_v7  ;;  %748 = vmatprep.subr.bf16.mxu0 %v747_v8  ;;  %v183_v7 = vld [vmem:[#allocation5 + $0x3f8] sm:$0xff]  ;;  %v765_v8 = vpack.c.bf16 %v133_v0, %v132_v63  ;;  %v797_v9 = vpack.c.bf16 %v165_v3, %v164_v1  ;;  %v134_v11 = vld [vmem:[#allocation5 + $0x270] sm:$0xff] }
  0x51   :  { %780 = vmatprep.subr.bf16.mxu1 %v779_v12  ;;  %502 = vmatprep.mubr.f32.mxu1 %v219_v49  ;;  %v135_v12 = vld [vmem:[#allocation5 + $0x278] sm:$0xff]  ;;  %v799_v14 = vpack.c.bf16 %v183_v7, %v182_v6  ;;  %v166_v15 = vld [vmem:[#allocation5 + $0x370] sm:$0xff] }
  0x52   :  { %v167_v16 = vld [vmem:[#allocation5 + $0x378] sm:$0xff]  ;;  %v769_v17 = vpack.c.bf16 %v135_v12, %v134_v11 }
  0x53   :  { %750 = vmatpush3.bf16.msra.mxu0 %v749_v19  ;;  %v801_v18 = vpack.c.bf16 %v167_v16, %v166_v15  ;;  %v534_v19 = vld [vmem:[%s970_s2] ss:$0 sm:$0xff]  ;;  %s890_s2 = smov [#allocation7]  }
  0x54   :  { %782 = vmatpush3.bf16.msra.mxu1 %v781_v20  ;;  %752 = vmatprep.subr.bf16.mxu0 %v751_v21  ;;  %52 = vst [vmem:[#allocation7] sm:$0x3] %v534_v19  ;;  %s524_s11 = sshll.u32 %s890_s2, 4  ;;  %s525_s11 = int_to_ptr.vmem [resolvable:$true] %s524_s11 }
  0x55   :  { %784 = vmatprep.subr.bf16.mxu1 %v783_v25  ;;  %s857_s12 = scalar_lea.vmem %s525_s11, 32  ;;  %p862_p3 = scmp.lt.s32.totalorder %s525_s11, %s525_s11 }
  0x56   :  { %p858_p2 = scmp.ne.s32.totalorder %s525_s11, %s857_s12  ;;  %p863_p4 = scmp.lt.s32.totalorder %s857_s12, %s857_s12 }
  0x57   :  { %754 = vmatpush3.bf16.msra.mxu0 %v753_v32 }
  0x58   :  { %786 = vmatpush3.bf16.msra.mxu1 %v785_v35  ;;  %756 = vmatprep.subr.bf16.mxu0 %v755_v36  ;;  %p864_p5 = por %p863_p4, %p862_p3 }
  0x59   :  { %788 = vmatprep.subr.bf16.mxu1 %v787_v40 }
  0x5a   :  { %p865_p6 = pnand %p864_p5, %p858_p2 }
  0x5b   :  { %758 = vmatpush3.bf16.msra.mxu0 %v757_v48  ;;  %v53_v34 = vld [vmem:[#allocation7] sm:$0x3] }
  0x5c   :  { %790 = vmatpush3.bf16.msra.mxu1 %v789_v50  ;;  %760 = vmatprep.subr.bf16.mxu0 %v759_v51 }
  0x5d   :  { %792 = vmatprep.subr.bf16.mxu1 %v791_v55 }
  0x5f   :  { %762 = vmatpush3.bf16.msra.mxu0 %v761_v60 }
  0x60   :  { %794 = vmatpush3.bf16.msra.mxu1 %v793_v61  ;;  %764 = vmatprep.subr.bf16.mxu0 %v763_v62 }
  0x61   :  { %796 = vmatprep.subr.bf16.mxu1 %v795_v2 }
  0x63   :  { %766 = vmatpush3.bf16.msra.mxu0 %v765_v8 }
  0x64   :  { %798 = vmatpush3.bf16.msra.mxu1 %v797_v9  ;;  %768 = vmatprep.subr.bf16.mxu0 %v767_v10 }
  0x65   :  { %800 = vmatprep.subr.bf16.mxu1 %v799_v14 }
  0x67   :  { %770 = vmatpush3.bf16.msra.mxu0 %v769_v17 }
  0x68   :  { %802 = vmatpush3.bf16.msra.mxu1 %v801_v18 }
  0x6a   :  { %433 = vmatmul.mubr.f32.vlgmr.msra.gmra.mrb[2].mxu0 %v947_v33 }
  0x6b   :  { %503 = vmatmul.mubr.f32.vlgmr.msra.gmra.mrb[2].mxu1 %v217_v45 }
 0x11d   :  { %v567_v20 = vpop.f32.mrb[0].mxu0 }
 0x11e   :  { %v602_v21 = vpop.f32.mrb[0].mxu1  ;;  %v568_v22 = vpop.f32.mrb[1].mxu0 }
 0x11f   :  { %v569_v23 = vadd.f32 %v568_v22, %v567_v20  ;;  %v603_v24 = vpop.f32.mrb[1].mxu1 }
 0x120   :  { %v604_v25 = vadd.f32 %v603_v24, %v602_v21 }
 0x122   :  { %v365_v26 = vadd.f32 %v604_v25, %v569_v23 }
 0x13d   :  { %v637_v27 = vpop.f32.mrb[2].mxu0 }
 0x13e   :  { %v638_v28 = vpop.f32.mrb[3].mxu0  ;;  %v672_v29 = vpop.f32.mrb[2].mxu1 }
 0x13f   :  { %v639_v30 = vadd.f32 %v638_v28, %v637_v27  ;;  %v673_v31 = vpop.f32.mrb[3].mxu1 }
 0x140   :  { %v674_v32 = vadd.f32 %v673_v31, %v672_v29 }
 0x141   :  { %v435_v33 = vadd.f32 %v639_v30, %v365_v26 }
 0x143   :  { %v505_v35 = vadd.f32 %v674_v32, %v435_v33 }
 0x145   :  { %v508_v36 = vadd.f32 %v505_v35, %v53_v34 }
 0x147   :  { %509 = vst [vmem:[#allocation7] sm:$0x3] %v508_v36 }
 0x14e   :  { %v513_v37 = vld [vmem:[#allocation7] sm:$0x3] }
 0x14f   :  { %811 = vtanh.f32 %v513_v37 }
 0x159   :  { %v812_v38 = vpop.eup %811 }
 0x15a   :  { %v515_v39 = vmul.f32 0.4995, %v812_v38 }
 0x15c   :  { %v516_v40 = vadd.f32 0.4995, %v515_v39 }
 0x15e   :  { %517 = vst [vmem:[#allocation7] sm:$0x3] %v516_v40 }
 0x15f   :  { %868 = shalt.err (!%p865_p6)
}
 0x160   :  { %s869_s15 = scalar_lea.hbm %s971_s3, 32 }
 0x161   :  { %p870_p7 = scmp.ne.s32.totalorder %s971_s3, %s869_s15  ;;  %p873_p8 = scmp.lt.u32.totalorder %s869_s15, %s971_s3 }
 0x163   :  { %p875_p9 = pnand %p873_p8, %p870_p7 }
 0x165   :  { %878 = shalt.err (!%p875_p9)
}
 0x166   :  { %527 = dma.vmem_to_hbm [thread:$0]  %s525_s11, 32, %s971_s3, [#allocation4]  }
 0x167   :  { %883 = dma.done.wait [#allocation4], 32  }
 0x168   :  { %884 = vsyncadd [#allocation4], 4294967264 }
 0x169   :  { %531 = vsyncpa [#allocation3], 1 }
 0x16a   :  { %532 = vsyncpa [#allocation6], 1 }
 0x16b   :  { %533 = vsyncpa [#allocation4], 1 }

</bundles_post_ra>
